<compile_context>
chip_gen: v7x
topology: tpu7x:2x2x1
jax: 0.10.0
libtpu: 0.0.40
codegen_flags: <defaults>
</compile_context>

<pallas_src>
import jax
import jax.numpy as jnp
from jax.experimental import pallas as pl
from jax.experimental.pallas import tpu as pltpu

_SQRT_2_OVER_PI = 0.7978845608028654  # sqrt(2 / pi)


def _ffn_gelu_kernel(x_ref, w1_ref, b1_ref, w2_ref, b2_ref, o_ref, acc_ref):
    # x: (tm, D), w1: (D, th), b1: (1, th), w2: (th, D), b2: (1, D)
    kh = pl.program_id(1)

    @pl.when(kh == 0)
    def _init():
        acc_ref[...] = jnp.zeros_like(acc_ref)

    # First matmul in native dtype (bf16 -> fast MXU path), f32 accumulation.
    h = jnp.dot(x_ref[...], w1_ref[...], preferred_element_type=jnp.float32)
    h = h + b1_ref[...].astype(jnp.float32)

    # tanh-approximation GELU, exactly matching the PyTorch module (kept in f32).
    inner = _SQRT_2_OVER_PI * (h + 0.044715 * (h * h * h))
    g = 0.5 * h * (1.0 + jnp.tanh(inner))

    # Downcast hidden activation before the second matmul (native MXU dtype,
    # half the VMEM/vreg footprint); accumulate in f32 scratch.
    g = g.astype(w2_ref.dtype)
    acc_ref[...] += jnp.dot(g, w2_ref[...], preferred_element_type=jnp.float32)

    @pl.when(kh == pl.num_programs(1) - 1)
    def _finalize():
        o_ref[...] = (acc_ref[...] + b2_ref[...].astype(jnp.float32)).astype(o_ref.dtype)


def _make_spec(shape, index_map, single_buffer=False):
    """BlockSpec helper; single-buffers grid-invariant blocks when supported."""
    if single_buffer:
        try:
            return pl.BlockSpec(shape, index_map, pipeline_mode=pl.Buffered(1))
        except Exception:  # older jax without pipeline_mode — fall through
            pass
    return pl.BlockSpec(shape, index_map)


def feed_forward_gelu(x, w1, b1, w2, b2, *, tile_rows=512, compute_dtype=None):
    """Fused Linear(D->4D) -> tanh-GELU -> Linear(4D->D).

    x: (..., D); w1: (D, 4D); b1: (4D,); w2: (4D, D); b2: (D,).
    If compute_dtype is given (e.g. jnp.bfloat16) inputs/weights are cast once
    in the wrapper; the output keeps the original dtype of x.
    """
    out_dtype = x.dtype
    if compute_dtype is not None:
        x = x.astype(compute_dtype)
        w1 = w1.astype(compute_dtype)
        b1 = b1.astype(compute_dtype)
        w2 = w2.astype(compute_dtype)
        b2 = b2.astype(compute_dtype)

    orig_shape = x.shape
    d = orig_shape[-1]
    hid = w1.shape[1]
    assert w1.shape == (d, hid) and w2.shape == (hid, d)
    assert b1.shape == (hid,) and b2.shape == (d,)

    rows = 1
    for s in orig_shape[:-1]:
        rows *= s
    x2 = x.reshape(rows, d)
    b1_2 = b1.reshape(1, hid)
    b2_2 = b2.reshape(1, d)

    x_it = jnp.dtype(x.dtype).itemsize
    w_it = jnp.dtype(w1.dtype).itemsize
    o_it = jnp.dtype(out_dtype).itemsize

    # Generation-aware VMEM budget (v5e/v6e: 128 MiB, v7x: 64 MiB per core).
    try:
        vmem_cap = int(pltpu.get_tpu_info().vmem_capacity_bytes)
    except Exception:
        vmem_cap = 64 << 20  # conservative fallback
    vmem_budget = max(vmem_cap - (16 << 20), vmem_cap // 2)

    def est(tm_, th_):
        wbuf = 1 if th_ == hid else 2          # resident weights -> single buffer
        e = 2 * tm_ * d * x_it                 # x tile, double-buffered
        e += 2 * tm_ * d * o_it                # out tile, double-buffered
        e += tm_ * d * 4                       # f32 accumulator scratch
        e += wbuf * (d * th_ + th_ * d) * w_it # W1 / W2 blocks
        e += wbuf * th_ * w_it + d * w_it      # b1 block + resident b2
        e += tm_ * th_ * (4 + w_it)            # f32 hidden activation + downcast
        return e

    # Row tile: multiple of 8 (sublane); 512 feeds the 256-wide MXU well.
    # No wrapper-side padding — Pallas masks the ragged last row block.
    tm = min(tile_rows, ((rows + 7) // 8) * 8)

    # Hidden-dim handling: resident weights if they fit, else stream chunks.
    cands = [hid] + [c for c in (4096, 2048, 1024, 512, 256, 128)
                     if c < hid and hid % c == 0]
    th = None
    while True:
        th = next((c for c in cands if est(tm, c) <= vmem_budget), None)
        if th is not None or tm <= 128:
            break
        tm = max(128, ((tm // 2) + 7) // 8 * 8)
    if th is None:
        th = cands[-1]  # smallest chunk; let the compiler manage the rest
    resident = th == hid
    n_h = hid // th
    n_rows = pl.cdiv(rows, tm)

    vmem_limit = int(min(max(2 * est(tm, th), 32 << 20), vmem_budget))

    out = pl.pallas_call(
        _ffn_gelu_kernel,
        out_shape=jax.ShapeDtypeStruct((rows, d), out_dtype),
        grid_spec=pltpu.PrefetchScalarGridSpec(
            num_scalar_prefetch=0,
            grid=(n_rows, n_h),
            in_specs=[
                _make_spec((tm, d), lambda i, k: (i, 0)),                             # x tile
                _make_spec((d, th), lambda i, k: (0, k), single_buffer=resident),     # W1
                _make_spec((1, th), lambda i, k: (0, k), single_buffer=resident),     # b1
                _make_spec((th, d), lambda i, k: (k, 0), single_buffer=resident),     # W2
                _make_spec((1, d), lambda i, k: (0, 0), single_buffer=True),          # b2
            ],
            out_specs=_make_spec((tm, d), lambda i, k: (i, 0)),
            scratch_shapes=[pltpu.VMEM((tm, d), jnp.float32)],
        ),
        compiler_params=pltpu.CompilerParams(
            dimension_semantics=("parallel", "arbitrary"),  # rows megacore-sharded
            vmem_limit_bytes=vmem_limit,
        ),
    )(x2, w1, b1_2, w2, b2_2)

    return out.reshape(orig_shape)


if __name__ == "__main__":
    # Small shapes consistent with the module: (batch, seq, emb_dim) activations.
    batch, seq, emb_dim = 2, 8, 32
    hidden = 4 * emb_dim

    key = jax.random.PRNGKey(0)
    kx, k1, k2, k3, k4 = jax.random.split(key, 5)

    x = jax.random.normal(kx, (batch, seq, emb_dim), dtype=jnp.float32)
    # Deterministic nn.Linear-like uniform init.
    lim1 = 1.0 / (emb_dim ** 0.5)
    lim2 = 1.0 / (hidden ** 0.5)
    w1 = jax.random.uniform(k1, (emb_dim, hidden), jnp.float32, -lim1, lim1)
    b1 = jax.random.uniform(k2, (hidden,), jnp.float32, -lim1, lim1)
    w2 = jax.random.uniform(k3, (hidden, emb_dim), jnp.float32, -lim2, lim2)
    b2 = jax.random.uniform(k4, (emb_dim,), jnp.float32, -lim2, lim2)

    # Pure-JAX reference (same tanh-GELU as the PyTorch module).
    h_ref = x @ w1 + b1
    h_ref = 0.5 * h_ref * (1.0 + jnp.tanh(_SQRT_2_OVER_PI * (h_ref + 0.044715 * h_ref ** 3)))
    ref = h_ref @ w2 + b2

    # f32 path — bit-compatible with the module's math.
    y = feed_forward_gelu(x, w1, b1, w2, b2)
    jax.block_until_ready(y)
    assert jnp.allclose(y, ref, atol=1e-5, rtol=1e-5), "f32 mismatch vs reference"

    # bf16 fast path (native MXU dtype, f32 accumulation) — looser tolerance.
    yb = feed_forward_gelu(x, w1, b1, w2, b2, compute_dtype=jnp.bfloat16)
    jax.block_until_ready(yb)
    assert jnp.allclose(yb.astype(jnp.float32), ref, atol=5e-2, rtol=5e-2), \
        "bf16 mismatch vs reference"

    print("KERNEL_OK")
</pallas_src>

<mosaic_0001>
module attributes {stable_mosaic.version = 11 : i64} {
  func.func @_ffn_gelu_kernel(%arg0: i32, %arg1: i32, %arg2: memref<16x32xf32, #tpu.memory_space<vmem>>, %arg3: memref<32x128xf32, #tpu.memory_space<vmem>>, %arg4: memref<1x128xf32, #tpu.memory_space<vmem>>, %arg5: memref<128x32xf32, #tpu.memory_space<vmem>>, %arg6: memref<1x32xf32, #tpu.memory_space<vmem>>, %arg7: memref<16x32xf32, #tpu.memory_space<vmem>>, %arg8: memref<16x32xf32, #tpu.memory_space<vmem>>) attributes {dimension_semantics = [#tpu.dimension_semantics<parallel>, #tpu.dimension_semantics<arbitrary>], iteration_bounds = array<i64: 1, 1>, scalar_prefetch = 0 : i64, scratch_operands = 1 : i64, tpu.core_type = #tpu.core_type<tc>, window_params = [{transform_indices = @transform_0, window_bounds = array<i64: 16, 32>}, {pipeline_mode = #tpu.pipeline_mode<synchronous>, transform_indices = @transform_1, window_bounds = array<i64: 32, 128>}, {pipeline_mode = #tpu.pipeline_mode<synchronous>, transform_indices = @transform_2, window_bounds = array<i64: 1, 128>}, {pipeline_mode = #tpu.pipeline_mode<synchronous>, transform_indices = @transform_3, window_bounds = array<i64: 128, 32>}, {pipeline_mode = #tpu.pipeline_mode<synchronous>, transform_indices = @transform_4, window_bounds = array<i64: 1, 32>}, {transform_indices = @transform_5, window_bounds = array<i64: 16, 32>}]} {
    %c0_i32 = arith.constant 0 : i32
    %0 = arith.cmpi eq, %arg1, %c0_i32 : i32
    %1 = arith.extui %0 : i1 to i32
    %c0_i32_0 = arith.constant 0 : i32
    %2 = arith.cmpi ne, %1, %c0_i32_0 : i32
    scf.if %2 {
      %cst_19 = arith.constant 0.000000e+00 : f32
      %30 = vector.broadcast %cst_19 : f32 to vector<16x32xf32>
      %c0_20 = arith.constant 0 : index
      %c0_21 = arith.constant 0 : index
      %31 = vector.load %arg8[%c0_20, %c0_21] : memref<16x32xf32, #tpu.memory_space<vmem>>, vector<16x32xf32>
      tpu.vector_store %arg8[%c0_20, %c0_21], %30 {strides = array<i32>} : memref<16x32xf32, #tpu.memory_space<vmem>>, vector<16x32xf32>,
    } else {
    }
    %c0 = arith.constant 0 : index
    %c0_1 = arith.constant 0 : index
    %3 = vector.load %arg2[%c0, %c0_1] : memref<16x32xf32, #tpu.memory_space<vmem>>, vector<16x32xf32>
    %c0_2 = arith.constant 0 : index
    %c0_3 = arith.constant 0 : index
    %4 = vector.load %arg3[%c0_2, %c0_3] : memref<32x128xf32, #tpu.memory_space<vmem>>, vector<32x128xf32>
    %cst = arith.constant dense<0.000000e+00> : vector<16x128xf32>
    %5 = tpu.matmul %3, %4, %cst {dimension_numbers = #tpu.dot_dimension_numbers<[1], [0], [0], [1], [0, 0, 1, 1], [], []>} : vector<16x32xf32>, vector<32x128xf32>, vector<16x128xf32> -> vector<16x128xf32>
    %c0_4 = arith.constant 0 : index
    %c0_5 = arith.constant 0 : index
    %6 = vector.load %arg4[%c0_4, %c0_5] : memref<1x128xf32, #tpu.memory_space<vmem>>, vector<1x128xf32>
    %7 = vector.broadcast %6 : vector<1x128xf32> to vector<16x128xf32>
    %8 = arith.addf %5, %7 : vector<16x128xf32>
    %9 = arith.mulf %8, %8 : vector<16x128xf32>
    %10 = arith.mulf %9, %8 : vector<16x128xf32>
    %cst_6 = arith.constant 4.471500e-02 : f32
    %11 = vector.broadcast %cst_6 : f32 to vector<16x128xf32>
    %12 = arith.mulf %11, %10 : vector<16x128xf32>
    %13 = arith.addf %8, %12 : vector<16x128xf32>
    %cst_7 = arith.constant 0.797884583 : f32
    %14 = vector.broadcast %cst_7 : f32 to vector<16x128xf32>
    %15 = arith.mulf %14, %13 : vector<16x128xf32>
    %cst_8 = arith.constant 5.000000e-01 : f32
    %16 = vector.broadcast %cst_8 : f32 to vector<16x128xf32>
    %17 = arith.mulf %16, %8 : vector<16x128xf32>
    %18 = math.tanh %15 : vector<16x128xf32>
    %cst_9 = arith.constant 1.000000e+00 : f32
    %19 = vector.broadcast %cst_9 : f32 to vector<16x128xf32>
    %20 = arith.addf %19, %18 : vector<16x128xf32>
    %21 = arith.mulf %17, %20 : vector<16x128xf32>
    %c0_10 = arith.constant 0 : index
    %c0_11 = arith.constant 0 : index
    %22 = vector.load %arg8[%c0_10, %c0_11] : memref<16x32xf32, #tpu.memory_space<vmem>>, vector<16x32xf32>
    %c0_12 = arith.constant 0 : index
    %c0_13 = arith.constant 0 : index
    %23 = vector.load %arg5[%c0_12, %c0_13] : memref<128x32xf32, #tpu.memory_space<vmem>>, vector<128x32xf32>
    %cst_14 = arith.constant dense<0.000000e+00> : vector<16x32xf32>
    %24 = tpu.matmul %21, %23, %cst_14 {dimension_numbers = #tpu.dot_dimension_numbers<[1], [0], [0], [1], [0, 0, 1, 1], [], []>} : vector<16x128xf32>, vector<128x32xf32>, vector<16x32xf32> -> vector<16x32xf32>
    %25 = arith.addf %22, %24 : vector<16x32xf32>
    %c0_15 = arith.constant 0 : index
    %c0_16 = arith.constant 0 : index
    %26 = vector.load %arg8[%c0_15, %c0_16] : memref<16x32xf32, #tpu.memory_space<vmem>>, vector<16x32xf32>
    tpu.vector_store %arg8[%c0_15, %c0_16], %25 {strides = array<i32>} : memref<16x32xf32, #tpu.memory_space<vmem>>, vector<16x32xf32>,
    %c0_i32_17 = arith.constant 0 : i32
    %27 = arith.cmpi eq, %arg1, %c0_i32_17 : i32
    %28 = arith.extui %27 : i1 to i32
    %c0_i32_18 = arith.constant 0 : i32
    %29 = arith.cmpi ne, %28, %c0_i32_18 : i32
    scf.if %29 {
      %c0_19 = arith.constant 0 : index
      %c0_20 = arith.constant 0 : index
      %30 = vector.load %arg8[%c0_19, %c0_20] : memref<16x32xf32, #tpu.memory_space<vmem>>, vector<16x32xf32>
      %c0_21 = arith.constant 0 : index
      %c0_22 = arith.constant 0 : index
      %31 = vector.load %arg6[%c0_21, %c0_22] : memref<1x32xf32, #tpu.memory_space<vmem>>, vector<1x32xf32>
      %32 = vector.broadcast %31 : vector<1x32xf32> to vector<16x32xf32>
      %33 = arith.addf %30, %32 : vector<16x32xf32>
      %c0_23 = arith.constant 0 : index
      %c0_24 = arith.constant 0 : index
      %34 = vector.load %arg7[%c0_23, %c0_24] : memref<16x32xf32, #tpu.memory_space<vmem>>, vector<16x32xf32>
      tpu.vector_store %arg7[%c0_23, %c0_24], %33 {strides = array<i32>} : memref<16x32xf32, #tpu.memory_space<vmem>>, vector<16x32xf32>,
    } else {
    }
    return
  }
  func.func @transform_0(%arg0: i32, %arg1: i32) -> (i32, i32) {
    %c0_i32 = arith.constant 0 : i32
    %c0_i32_0 = arith.constant 0 : i32
    return %arg0, %c0_i32 : i32, i32
  }
  func.func @transform_1(%arg0: i32, %arg1: i32) -> (i32, i32) {
    %c0_i32 = arith.constant 0 : i32
    %c0_i32_0 = arith.constant 0 : i32
    return %c0_i32, %arg1 : i32, i32
  }
  func.func @transform_2(%arg0: i32, %arg1: i32) -> (i32, i32) {
    %c0_i32 = arith.constant 0 : i32
    %c0_i32_0 = arith.constant 0 : i32
    return %c0_i32, %arg1 : i32, i32
  }
  func.func @transform_3(%arg0: i32, %arg1: i32) -> (i32, i32) {
    %c0_i32 = arith.constant 0 : i32
    %c0_i32_0 = arith.constant 0 : i32
    return %arg1, %c0_i32 : i32, i32
  }
  func.func @transform_4(%arg0: i32, %arg1: i32) -> (i32, i32) {
    %c0_i32 = arith.constant 0 : i32
    %c0_i32_0 = arith.constant 0 : i32
    %c0_i32_1 = arith.constant 0 : i32
    return %c0_i32, %c0_i32_0 : i32, i32
  }
  func.func @transform_5(%arg0: i32, %arg1: i32) -> (i32, i32) {
    %c0_i32 = arith.constant 0 : i32
    %c0_i32_0 = arith.constant 0 : i32
    return %arg0, %c0_i32 : i32, i32
  }
}

</mosaic_0001>

<bundles_post_ra>
// kernel: tpu_custom_call.1
= control target key start
LH: loop header
LB: loop body
LE: loop exit
PB: predicated region body
PF: predicated region fallthrough
CT: control target
= control target key end

     0   :  { %vm25_vm0 = vcmask 261120   ;;  %s542_s0 = inlined_call_operand.vmem [shape: f32[16,32], index: 0, kind: input, shape index: {}]   ;;  %s543_s1 = inlined_call_operand.vmem [shape: f32[32,128], index: 1, kind: input, shape index: {}]   ;;  %s544_s2 = inlined_call_operand.vmem [shape: f32[1,128], index: 2, kind: input, shape index: {}]   ;;  %s545_s3 = inlined_call_operand.vmem [shape: f32[128,32], index: 3, kind: input, shape index: {}]   ;;  %s546_s4 = inlined_call_operand.vmem [shape: f32[1,32], index: 4, kind: input, shape index: {}]   ;;  %s547_s5 = inlined_call_operand.hbm [shape: f32[16,32], index: 5, kind: output, shape index: {}]  }
   0x1   :  { %v30_v0 = vld [vmem:[%s543_s1] sm:$0xff]  ;;  %v31_v1 = vld [vmem:[%s543_s1 + $0x8] sm:$0xff]  ;;  %v32_v2 = vld [vmem:[%s543_s1 + $0x10] sm:$0xff] }
   0x2   :  { %v344_v3 = vpack.c.bf16 %v31_v1, %v30_v0  ;;  %v33_v4 = vld [vmem:[%s543_s1 + $0x18] sm:$0xff]  ;;  %v28_v5 = vld [vmem:[%s542_s0] sm:$0xff]  ;;  %v144_v8 = vld [vmem:[%s545_s3 + $0x8] sm:$0xff] }
   0x3   :  { %v348_v6 = vpack.c.bf16 %v33_v4, %v32_v2  ;;  %306 = vmatprep.mubr.msk.f32.mxu0 %vm25_vm0, %v28_v5  ;;  %v143_v7 = vld [vmem:[%s545_s3] sm:$0xff] }
   0x4   :  { %10 = vsyncpa [#allocation4], 0  ;;  %345 = vmatprep.subr.bf16.mxu0 %v344_v3  ;;  %v352_v9 = vpack.c.bf16 %v144_v8, %v143_v7  ;;  %v29_v10 = vld [vmem:[%s542_s0 + $0x8] sm:$0xff]  ;;  %v145_v11 = vld [vmem:[%s545_s3 + $0x10] sm:$0xff]  ;;  %v416_v32 = vmov 0.0   ;;  %s417_s11 = smov [#allocation3]  }
   0x5   :  { %347 = vmatpush3.bf16.msra.mxu0 %v344_v3  ;;  %v146_v12 = vld [vmem:[%s545_s3 + $0x18] sm:$0xff]  ;;  %v147_v14 = vld [vmem:[%s545_s3 + $0x20] sm:$0xff]  ;;  %v148_v15 = vld [vmem:[%s545_s3 + $0x28] sm:$0xff]  ;;  %27 = vst.msk [vmem:[#allocation2 + $0x8] sm:$0xff] %vm25_vm0, %v416_v32  ;;  %s259_s12 = sshll.u32 %s417_s11, 4  ;;  %s260_s12 = int_to_ptr.vmem [resolvable:$true] %s259_s12 }
   0x6   :  { %349 = vmatprep.subr.bf16.mxu0 %v348_v6  ;;  %353 = vmatprep.subr.bf16.mxu1 %v352_v9  ;;  %v356_v13 = vpack.c.bf16 %v146_v12, %v145_v11  ;;  %v360_v16 = vpack.c.bf16 %v148_v15, %v147_v14  ;;  %v149_v17 = vld [vmem:[%s545_s3 + $0x30] sm:$0xff]  ;;  %v150_v18 = vld [vmem:[%s545_s3 + $0x38] sm:$0xff]  ;;  %v151_v20 = vld [vmem:[%s545_s3 + $0x40] sm:$0xff]  ;;  %26 = vst.msk [vmem:[#allocation2] sm:$0xff] %vm25_vm0, %v416_v32  ;;  %s392_s13 = scalar_lea.vmem %s260_s12, 256  ;;  %p397_p1 = scmp.lt.s32.totalorder %s260_s12, %s260_s12 }
   0x7   :  { %355 = vmatpush3.bf16.msra.mxu1 %v352_v9  ;;  %v364_v19 = vpack.c.bf16 %v150_v18, %v149_v17  ;;  %v152_v21 = vld [vmem:[%s545_s3 + $0x48] sm:$0xff]  ;;  %v153_v22 = vld [vmem:[%s545_s3 + $0x50] sm:$0xff]  ;;  %v154_v24 = vld [vmem:[%s545_s3 + $0x58] sm:$0xff]  ;;  %p393_p0 = scmp.ne.s32.totalorder %s260_s12, %s392_s13  ;;  %p398_p2 = scmp.lt.s32.totalorder %s392_s13, %s392_s13 }
   0x8   :  { %357 = vmatprep.subr.bf16.mxu1 %v356_v13  ;;  %v368_v23 = vpack.c.bf16 %v152_v21, %v151_v20  ;;  %v372_v25 = vpack.c.bf16 %v154_v24, %v153_v22  ;;  %v155_v26 = vld [vmem:[%s545_s3 + $0x60] sm:$0xff]  ;;  %v156_v27 = vld [vmem:[%s545_s3 + $0x68] sm:$0xff]  ;;  %v157_v29 = vld [vmem:[%s545_s3 + $0x70] sm:$0xff] }
   0x9   :  { %351 = vmatpush3.bf16.msra.mxu0 %v348_v6  ;;  %v376_v28 = vpack.c.bf16 %v156_v27, %v155_v26  ;;  %v158_v30 = vld [vmem:[%s545_s3 + $0x78] sm:$0xff]  ;;  %v270_v33 = vld [vmem:[%s544_s2] ss:$0 sm:$0xff]  ;;  %p399_p3 = por %p398_p2, %p397_p1 }
   0xa   :  { %v380_v31 = vpack.c.bf16 %v158_v30, %v157_v29  ;;  %v273_v62 = vld [vmem:[%s546_s4] ss:$0 sm:$0xff] }
   0xb   :  { %359 = vmatpush3.bf16.msra.mxu1 %v356_v13  ;;  %p400_p4 = pnand %p399_p3, %p393_p0 }
   0xc   :  { %307 = vmatmul.mubr.msk.f32.vlgmr.msra.gmra.mrb[0].mxu0 %vm25_vm0, %v29_v10  ;;  %361 = vmatprep.subr.bf16.mxu1 %v360_v16  ;;  %v142_v56 = vld [vmem:[#allocation2 + $0x8] sm:$0xff] }
   0xd   :  { %v141_v57 = vld [vmem:[#allocation2] sm:$0xff] }
   0xf   :  { %363 = vmatpush3.bf16.msra.mxu1 %v360_v16 }
  0x10   :  { %365 = vmatprep.subr.bf16.mxu1 %v364_v19 }
  0x13   :  { %367 = vmatpush3.bf16.msra.mxu1 %v364_v19 }
  0x14   :  { %369 = vmatprep.subr.bf16.mxu1 %v368_v23 }
  0x17   :  { %371 = vmatpush3.bf16.msra.mxu1 %v368_v23 }
  0x18   :  { %373 = vmatprep.subr.bf16.mxu1 %v372_v25 }
  0x1b   :  { %375 = vmatpush3.bf16.msra.mxu1 %v372_v25 }
  0x1c   :  { %377 = vmatprep.subr.bf16.mxu1 %v376_v28 }
  0x1f   :  { %379 = vmatpush3.bf16.msra.mxu1 %v376_v28 }
  0x20   :  { %381 = vmatprep.subr.bf16.mxu1 %v380_v31 }
  0x23   :  { %383 = vmatpush3.bf16.msra.mxu1 %v380_v31 }
  0xdf   :  { %v308_v34 = vpop.f32.mrb[0].mxu0 }
  0xe0   :  { %v120_v35 = vadd.f32 %v308_v34, %v270_v33  ;;  %v114_v36 = vpop.f32.mrb[1].mxu0 }
  0xe1   :  { %v115_v37 = vadd.f32 %v270_v33, %v114_v36 }
  0xe2   :  { %v124_v38 = vmul.f32 %v120_v35, %v120_v35  ;;  %v134_v53 = vmul.f32 0.5, %v120_v35 }
  0xe3   :  { %v123_v39 = vmul.f32 %v115_v37, %v115_v37  ;;  %v133_v51 = vmul.f32 0.5, %v115_v37 }
  0xe4   :  { %v126_v40 = vmul.f32 %v124_v38, %v120_v35 }
  0xe5   :  { %v125_v41 = vmul.f32 %v123_v39, %v115_v37 }
  0xe6   :  { %v128_v42 = vmul.f32 0.044715, %v126_v40 }
  0xe7   :  { %v127_v43 = vmul.f32 0.044715, %v125_v41 }
  0xe8   :  { %v130_v44 = vadd.f32 %v128_v42, %v120_v35 }
  0xe9   :  { %v129_v45 = vadd.f32 %v127_v43, %v115_v37 }
  0xea   :  { %v132_v46 = vmul.f32 0.7978846, %v130_v44 }
  0xeb   :  { %v131_v47 = vmul.f32 0.7978846, %v129_v45 }
  0xec   :  { %388 = vtanh.f32 %v132_v46 }
  0xed   :  { %390 = vtanh.f32 %v131_v47 }
  0xf6   :  { %v389_v48 = vpop.eup %388 }
  0xf7   :  { %v391_v49 = vpop.eup %390  ;;  %v138_v50 = vadd.f32 1.0, %v389_v48 }
  0xf8   :  { %v137_v52 = vadd.f32 1.0, %v391_v49 }
  0xf9   :  { %v140_v55 = vmul.f32 %v138_v50, %v134_v53 }
  0xfa   :  { %v139_v54 = vmul.f32 %v137_v52, %v133_v51 }
  0xfc   :  { %341 = vmatprep.mubr.f32.mxu1 %v139_v54 }
  0xfd   :  { %342 = vmatmul.mubr.f32.vlgmr.msra.gmra.mrb[0].mxu1 %v140_v55 }
 0x1d0   :  { %v343_v58 = vpop.f32.mrb[0].mxu1 }
 0x1d1   :  { %v235_v59 = vadd.f32 %v343_v58, %v142_v56  ;;  %v225_v60 = vpop.f32.mrb[1].mxu1 }
 0x1d2   :  { %v234_v61 = vadd.f32 %v225_v60, %v141_v57 }
 0x1d3   :  { %237 = vst.msk [vmem:[#allocation2 + $0x8] sm:$0xff] %vm25_vm0, %v235_v59 }
 0x1d4   :  { %236 = vst.msk [vmem:[#allocation2] sm:$0xff] %vm25_vm0, %v234_v61 }
 0x1da   :  { %v242_v63 = vld [vmem:[#allocation2 + $0x8] sm:$0xff] }
 0x1db   :  { %v241_v0 = vld [vmem:[#allocation2] sm:$0xff]  ;;  %v251_v1 = vadd.f32 %v273_v62, %v242_v63 }
 0x1dc   :  { %v250_v2 = vadd.f32 %v273_v62, %v241_v0 }
 0x1dd   :  { %253 = vst.msk [vmem:[#allocation3 + $0x8] sm:$0xff] %vm25_vm0, %v251_v1 }
 0x1de   :  { %252 = vst.msk [vmem:[#allocation3] sm:$0xff] %vm25_vm0, %v250_v2 }
 0x1df   :  { %403 = shalt.err (!%p400_p4)
}
 0x1e0   :  { %s404_s15 = scalar_lea.hbm %s547_s5, 256 }
 0x1e1   :  { %p405_p5 = scmp.ne.s32.totalorder %s547_s5, %s404_s15  ;;  %p408_p6 = scmp.lt.u32.totalorder %s404_s15, %s547_s5 }
 0x1e3   :  { %p410_p7 = pnand %p408_p6, %p405_p5 }
 0x1e5   :  { %413 = shalt.err (!%p410_p7)
}
 0x1e6   :  { %s418_s19 = smov 128   ;;  %s419_s20 = smov 8  }
 0x1e7   :  { %265 = dma.vmem_to_hbm [thread:$0]  %s260_s12, 256, %s547_s5, [#allocation4], %s418_s19, %s418_s19, %s419_s20  }
 0x1e8   :  { %414 = dma.done.wait [#allocation4], 256  }
 0x1e9   :  { %415 = vsyncadd [#allocation4], 4294967040 }
 0x1ea   :  { %269 = vsyncpa [#allocation4], 1 }

</bundles_post_ra>
